<compile_context>
chip_gen: v7x
topology: tpu7x:2x2x1
jax: 0.10.0
libtpu: 0.0.40
codegen_flags: <defaults>
</compile_context>

<pallas_src>
import math

import jax
import jax.numpy as jnp
from jax.experimental import pallas as pl
from jax.experimental.pallas import tpu as pltpu

_LANE = 128      # vreg lane width


def _round_up(n, m):
    return ((n + m - 1) // m) * m


def _make_fused_mlp_kernel(n_layers):
    """Fused (Linear -> ReLU -> Dropout[eval]) x n_layers kernel body."""

    def kernel(*refs):
        # refs = (x_ref, w0_ref, b0_ref, w1_ref, b1_ref, ..., o_ref)
        x_ref = refs[0]
        o_ref = refs[-1]
        h = x_ref[...]                                     # (TB, Din) f32
        for l in range(n_layers):
            w_ref = refs[1 + 2 * l]                        # (Din_l, Dout_l) bf16
            b_ref = refs[2 + 2 * l]                        # (1, Dout_l)    f32
            a = h.astype(jnp.bfloat16)                     # bf16 MXU operand
            h = jnp.dot(a, w_ref[...],
                        preferred_element_type=jnp.float32)
            # f32 epilogue (bias + ReLU); kept f32 so v5e (no bf16 VPU) is fine.
            h = jnp.maximum(h + b_ref[...], 0.0)
            # Dropout (eval mode) == identity.
        o_ref[...] = h.astype(o_ref.dtype)

    return kernel


def init_fcbody_params(key, state_dim, hidden_units=(64, 32), w_scale=1.0,
                       w_dtype=jnp.bfloat16):
    """kaiming_normal_ (fan_in, gain=sqrt(2)) weights, zero bias.

    Weights are stored as (in, out) -- the transpose of nn.Linear -- in bf16.
    Intermediate layers' output dims are zero-padded to a multiple of 128 so
    the in-VMEM activations stay lane-dense; the FINAL layer is left unpadded
    so the HBM writeback is exactly (B, feature_dim). Zero padding is exact:
    padded columns give relu(0 + 0) = 0 and the corresponding (zero) rows of
    the next layer's weight contribute nothing.
    """
    dims = (state_dim,) + tuple(hidden_units)
    n_layers = len(hidden_units)
    params = []
    in_dim = dims[0]                       # first-layer input stays unpadded
    for li, (l1, l2) in enumerate(zip(dims[:-1], dims[1:])):
        key, wkey = jax.random.split(key)
        std = math.sqrt(2.0 / l1)          # kaiming_normal_, fan_in, gain sqrt(2)
        w = jax.random.normal(wkey, (l1, l2), dtype=jnp.float32) * std * w_scale
        is_last = li == n_layers - 1
        out_dim = l2 if is_last else _round_up(l2, _LANE)
        w_p = jnp.zeros((in_dim, out_dim), dtype=w_dtype).at[:l1, :l2].set(
            w.astype(w_dtype))
        b_p = jnp.zeros((1, out_dim), dtype=jnp.float32)
        params.append((w_p, b_p))
        in_dim = out_dim                   # next layer consumes padded features
    return params


def fcbody_forward(x, params, *, batch_tile=512):
    """x: (B, state_dim) f32 -> (B, feature_dim) f32, single fused pallas_call."""
    B, d_in = x.shape
    n_layers = len(params)
    feat_out = params[-1][0].shape[1]      # final layer is unpadded

    # Batch tiling: one "parallel" grid axis. batch_tile is a multiple of 16
    # (bf16 sublane packing); for small batches the block equals the full
    # batch dim (always legal), so x is never padded and a ragged last block
    # for large batches is handled by Pallas' masked boundary stores.
    tb = B if B <= batch_tile else batch_tile
    grid = (pl.cdiv(B, tb),)

    in_specs = [pl.BlockSpec((tb, d_in), lambda i: (i, 0))]
    flat_args = [x]
    for w, b in params:
        # Constant block index along the batch axis -> weights/bias stay
        # VMEM-resident across grid steps (DMA'd once).
        # NOTE: pipeline_mode=pl.Buffered(1) would drop their redundant second
        # buffer (~100 KB here); left at default since VMEM headroom is ample.
        in_specs.append(pl.BlockSpec(w.shape, lambda i: (0, 0)))
        in_specs.append(pl.BlockSpec(b.shape, lambda i: (0, 0)))
        flat_args += [w, b]

    # VMEM per step (double-buffered x/out tiles + weights) is a few MB at
    # tb=512 even for hidden_units=(400, 300) -- well under the 32 MiB scoped
    # default on every generation (and v7x's 64 MiB physical), so no
    # vmem_limit_bytes override is needed.
    return pl.pallas_call(
        _make_fused_mlp_kernel(n_layers),
        out_shape=jax.ShapeDtypeStruct((B, feat_out), x.dtype),
        grid=grid,
        in_specs=in_specs,
        out_specs=pl.BlockSpec((tb, feat_out), lambda i: (i, 0)),
        compiler_params=pltpu.CompilerParams(
            dimension_semantics=("parallel",),
        ),
    )(*flat_args)


def _reference(x, params):
    """Pure-JAX reference mirroring the kernel's bf16-operand matmuls."""
    h = x
    for w, b in params:
        a = h.astype(jnp.bfloat16).astype(jnp.float32)
        h = jnp.maximum(a @ w.astype(jnp.float32) + b, 0.0)
    return h


if __name__ == "__main__":
    key = jax.random.PRNGKey(0)
    state_dim = 16
    hidden_units = (64, 32)

    key, pkey = jax.random.split(key)
    params = init_fcbody_params(pkey, state_dim, hidden_units)

    # Case 1: small batch (single grid step, block == full batch dim).
    key, xkey = jax.random.split(key)
    x = jax.random.normal(xkey, (8, state_dim), dtype=jnp.float32)
    out = jax.block_until_ready(fcbody_forward(x, params))
    assert out.shape == (8, hidden_units[-1])
    assert jnp.allclose(out, _reference(x, params), atol=1e-3, rtol=1e-3), \
        "mismatch vs reference (case 1)"

    # Case 2: multi-step grid with a ragged last block (no wrapper-side pad,
    # no post-kernel slice) -- exercises the masked boundary store path.
    key, xkey = jax.random.split(key)
    x2 = jax.random.normal(xkey, (24, state_dim), dtype=jnp.float32)
    out2 = jax.block_until_ready(fcbody_forward(x2, params, batch_tile=16))
    assert out2.shape == (24, hidden_units[-1])
    assert jnp.allclose(out2, _reference(x2, params), atol=1e-3, rtol=1e-3), \
        "mismatch vs reference (case 2)"

    print("KERNEL_OK")
</pallas_src>

<mosaic_0001>
module attributes {stable_mosaic.version = 11 : i64} {
  func.func @kernel(%arg0: i32, %arg1: memref<8x16xf32, #tpu.memory_space<vmem>>, %arg2: memref<16x128xbf16, #tpu.memory_space<vmem>>, %arg3: memref<1x128xf32, #tpu.memory_space<vmem>>, %arg4: memref<128x32xbf16, #tpu.memory_space<vmem>>, %arg5: memref<1x32xf32, #tpu.memory_space<vmem>>, %arg6: memref<8x32xf32, #tpu.memory_space<vmem>>) attributes {dimension_semantics = [#tpu.dimension_semantics<parallel>], iteration_bounds = array<i64: 1>, scalar_prefetch = 0 : i64, scratch_operands = 0 : i64, tpu.core_type = #tpu.core_type<tc>, window_params = [{transform_indices = @transform_0, window_bounds = array<i64: 8, 16>}, {pipeline_mode = #tpu.pipeline_mode<synchronous>, transform_indices = @transform_1, window_bounds = array<i64: 16, 128>}, {pipeline_mode = #tpu.pipeline_mode<synchronous>, transform_indices = @transform_2, window_bounds = array<i64: 1, 128>}, {pipeline_mode = #tpu.pipeline_mode<synchronous>, transform_indices = @transform_3, window_bounds = array<i64: 128, 32>}, {pipeline_mode = #tpu.pipeline_mode<synchronous>, transform_indices = @transform_4, window_bounds = array<i64: 1, 32>}, {transform_indices = @transform_5, window_bounds = array<i64: 8, 32>}]} {
    %c0 = arith.constant 0 : index
    %c0_0 = arith.constant 0 : index
    %0 = vector.load %arg1[%c0, %c0_0] : memref<8x16xf32, #tpu.memory_space<vmem>>, vector<8x16xf32>
    %1 = arith.truncf %0 : vector<8x16xf32> to vector<8x16xbf16>
    %c0_1 = arith.constant 0 : index
    %c0_2 = arith.constant 0 : index
    %2 = vector.load %arg2[%c0_1, %c0_2] : memref<16x128xbf16, #tpu.memory_space<vmem>>, vector<16x128xbf16>
    %cst = arith.constant dense<0.000000e+00> : vector<8x128xf32>
    %3 = tpu.matmul %1, %2, %cst {dimension_numbers = #tpu.dot_dimension_numbers<[1], [0], [0], [1], [0, 0, 1, 1], [], []>} : vector<8x16xbf16>, vector<16x128xbf16>, vector<8x128xf32> -> vector<8x128xf32>
    %c0_3 = arith.constant 0 : index
    %c0_4 = arith.constant 0 : index
    %4 = vector.load %arg3[%c0_3, %c0_4] : memref<1x128xf32, #tpu.memory_space<vmem>>, vector<1x128xf32>
    %5 = vector.broadcast %4 : vector<1x128xf32> to vector<8x128xf32>
    %6 = arith.addf %3, %5 : vector<8x128xf32>
    %cst_5 = arith.constant 0.000000e+00 : f32
    %7 = vector.broadcast %cst_5 : f32 to vector<8x128xf32>
    %8 = arith.maximumf %6, %7 : vector<8x128xf32>
    %9 = arith.truncf %8 : vector<8x128xf32> to vector<8x128xbf16>
    %c0_6 = arith.constant 0 : index
    %c0_7 = arith.constant 0 : index
    %10 = vector.load %arg4[%c0_6, %c0_7] : memref<128x32xbf16, #tpu.memory_space<vmem>>, vector<128x32xbf16>
    %cst_8 = arith.constant dense<0.000000e+00> : vector<8x32xf32>
    %11 = tpu.matmul %9, %10, %cst_8 {dimension_numbers = #tpu.dot_dimension_numbers<[1], [0], [0], [1], [0, 0, 1, 1], [], []>} : vector<8x128xbf16>, vector<128x32xbf16>, vector<8x32xf32> -> vector<8x32xf32>
    %c0_9 = arith.constant 0 : index
    %c0_10 = arith.constant 0 : index
    %12 = vector.load %arg5[%c0_9, %c0_10] : memref<1x32xf32, #tpu.memory_space<vmem>>, vector<1x32xf32>
    %13 = vector.broadcast %12 : vector<1x32xf32> to vector<8x32xf32>
    %14 = arith.addf %11, %13 : vector<8x32xf32>
    %cst_11 = arith.constant 0.000000e+00 : f32
    %15 = vector.broadcast %cst_11 : f32 to vector<8x32xf32>
    %16 = arith.maximumf %14, %15 : vector<8x32xf32>
    %c0_12 = arith.constant 0 : index
    %c0_13 = arith.constant 0 : index
    %17 = vector.load %arg6[%c0_12, %c0_13] : memref<8x32xf32, #tpu.memory_space<vmem>>, vector<8x32xf32>
    tpu.vector_store %arg6[%c0_12, %c0_13], %16 {strides = array<i32>} : memref<8x32xf32, #tpu.memory_space<vmem>>, vector<8x32xf32>,
    return
  }
  func.func @transform_0(%arg0: i32) -> (i32, i32) {
    %c0_i32 = arith.constant 0 : i32
    %c0_i32_0 = arith.constant 0 : i32
    return %arg0, %c0_i32 : i32, i32
  }
  func.func @transform_1(%arg0: i32) -> (i32, i32) {
    %c0_i32 = arith.constant 0 : i32
    %c0_i32_0 = arith.constant 0 : i32
    %c0_i32_1 = arith.constant 0 : i32
    return %c0_i32, %c0_i32_0 : i32, i32
  }
  func.func @transform_2(%arg0: i32) -> (i32, i32) {
    %c0_i32 = arith.constant 0 : i32
    %c0_i32_0 = arith.constant 0 : i32
    %c0_i32_1 = arith.constant 0 : i32
    return %c0_i32, %c0_i32_0 : i32, i32
  }
  func.func @transform_3(%arg0: i32) -> (i32, i32) {
    %c0_i32 = arith.constant 0 : i32
    %c0_i32_0 = arith.constant 0 : i32
    %c0_i32_1 = arith.constant 0 : i32
    return %c0_i32, %c0_i32_0 : i32, i32
  }
  func.func @transform_4(%arg0: i32) -> (i32, i32) {
    %c0_i32 = arith.constant 0 : i32
    %c0_i32_0 = arith.constant 0 : i32
    %c0_i32_1 = arith.constant 0 : i32
    return %c0_i32, %c0_i32_0 : i32, i32
  }
  func.func @transform_5(%arg0: i32) -> (i32, i32) {
    %c0_i32 = arith.constant 0 : i32
    %c0_i32_0 = arith.constant 0 : i32
    return %arg0, %c0_i32 : i32, i32
  }
}

</mosaic_0001>

<bundles_post_ra>
// kernel: tpu_custom_call.1
= control target key start
LH: loop header
LB: loop body
LE: loop exit
PB: predicated region body
PF: predicated region fallthrough
CT: control target
= control target key end

     0   :  { %v298_v1 = vmov 0.0   ;;  %vm39_vm0 = vcmask 130048   ;;  %vm299_vm1 = vmmov 0   ;;  %s379_s0 = inlined_call_operand.vmem [shape: f32[8,16], index: 0, kind: input, shape index: {}]   ;;  %s380_s1 = inlined_call_operand.vmem [shape: bf16[16,128], index: 1, kind: input, shape index: {}]   ;;  %s381_s2 = inlined_call_operand.vmem [shape: f32[1,128], index: 2, kind: input, shape index: {}]   ;;  %s382_s3 = inlined_call_operand.vmem [shape: bf16[128,32], index: 3, kind: input, shape index: {}]   ;;  %s383_s4 = inlined_call_operand.vmem [shape: f32[1,32], index: 4, kind: input, shape index: {}]   ;;  %s384_s5 = inlined_call_operand.hbm [shape: f32[8,32], index: 5, kind: output, shape index: {}]  }
   0x1   :  { %v265_v0 = vld [vmem:[%s380_s1] sm:$0xff]   ;;  %236 = vmatprep.subr.bf16.mxu0 %v298_v1  ;;  %242 = vmatprep.subr.bf16.mxu1 %v298_v1  ;;  %v267_v5 = vld [vmem:[%s382_s3 + $0x8] sm:$0xff]   ;;  %v268_v6 = vld [vmem:[%s382_s3 + $0x10] sm:$0xff]  }
   0x2   :  { %v22_v2 = vld [vmem:[%s379_s0] sm:$0xff]  ;;  %237 = vmatpush3.bf16.msra.mxu0 %v265_v0  ;;  %238 = vmatprep.mubr.msk.bf16.mxu0 %vm299_vm1, %v298_v1 }
   0x3   :  { %v266_v3 = vld [vmem:[%s382_s3] sm:$0xff]   ;;  %v23_v4 = vpack.c.bf16 %v22_v2, %v22_v2  ;;  %258 = vmatprep.mubr.msk.bf16.mxu1 %vm299_vm1, %v298_v1 }
   0x4   :  { %243 = vmatpush3.bf16.msra.mxu1 %v266_v3 }
   0x5   :  { %244 = vmatprep.subr.bf16.mxu1 %v298_v1  ;;  %239 = vmatmul.mubr.msk.bf16.vlgmr.msra.gmra.mrb[0].mxu0 %vm39_vm0, %v23_v4 }
   0x8   :  { %245 = vmatpush3.bf16.msra.mxu1 %v267_v5 }
   0x9   :  { %246 = vmatprep.subr.bf16.mxu1 %v298_v1 }
   0xa   :  { %10 = vsyncpa [#allocation3], 0  ;;  %v269_v7 = vld [vmem:[%s382_s3 + $0x18] sm:$0xff]   ;;  %v270_v8 = vld [vmem:[%s382_s3 + $0x20] sm:$0xff]   ;;  %s300_s15 = smov [#allocation2]   ;;  %vm197_vm2 = vcmask 261120  }
   0xb   :  { %v271_v9 = vld [vmem:[%s382_s3 + $0x28] sm:$0xff]   ;;  %v272_v10 = vld [vmem:[%s382_s3 + $0x30] sm:$0xff]   ;;  %v273_v11 = vld [vmem:[%s382_s3 + $0x38] sm:$0xff]   ;;  %s205_s3 = sshll.u32 %s300_s15, 4  ;;  %s206_s3 = int_to_ptr.vmem [resolvable:$true] %s205_s3 }
   0xc   :  { %247 = vmatpush3.bf16.msra.mxu1 %v268_v6  ;;  %v213_v12 = vld [vmem:[%s381_s2] ss:$0 sm:$0xff]  ;;  %s274_s2 = scalar_lea.vmem %s206_s3, 128  ;;  %p279_p1 = scmp.lt.s32.totalorder %s206_s3, %s206_s3 }
   0xd   :  { %248 = vmatprep.subr.bf16.mxu1 %v298_v1  ;;  %v216_v20 = vld [vmem:[%s383_s4] ss:$0 sm:$0xff]  ;;  %p275_p0 = scmp.ne.s32.totalorder %s206_s3, %s274_s2  ;;  %p280_p2 = scmp.lt.s32.totalorder %s274_s2, %s274_s2 }
   0xf   :  { %p281_p3 = por %p280_p2, %p279_p1 }
  0x10   :  { %249 = vmatpush3.bf16.msra.mxu1 %v269_v7 }
  0x11   :  { %250 = vmatprep.subr.bf16.mxu1 %v298_v1  ;;  %p282_p4 = pnand %p281_p3, %p275_p0 }
  0x14   :  { %251 = vmatpush3.bf16.msra.mxu1 %v270_v8 }
  0x15   :  { %252 = vmatprep.subr.bf16.mxu1 %v298_v1 }
  0x18   :  { %253 = vmatpush3.bf16.msra.mxu1 %v271_v9 }
  0x19   :  { %254 = vmatprep.subr.bf16.mxu1 %v298_v1 }
  0x1c   :  { %255 = vmatpush3.bf16.msra.mxu1 %v272_v10 }
  0x1d   :  { %256 = vmatprep.subr.bf16.mxu1 %v298_v1 }
  0x20   :  { %257 = vmatpush3.bf16.msra.mxu1 %v273_v11 }
  0xd8   :  { %v77_v13 = vpop.f32.mrb[0].mxu0 }
  0xd9   :  { %v78_v14 = vadd.f32 %v213_v12, %v77_v13  ;;  %v240_v15 = vpop.f32.mrb[1].mxu0 }
  0xda   :  { %v80_v16 = vpop.f32.mrb[2].mxu0 }
  0xdb   :  { %v83_v17 = vmax.f32 %v78_v14, 0.0  ;;  %v241_v18 = vpop.f32.mrb[3].mxu0 }
  0xdd   :  { %v84_v19 = vpack.c.bf16 %v83_v17, %v83_v17 }
  0xdf   :  { %259 = vmatmul.mubr.bf16.vlgmr.msra.gmra.mrb[0].mxu1 %v84_v19 }
 0x1b2   :  { %v190_v21 = vpop.f32.mrb[0].mxu1 }
 0x1b3   :  { %v191_v22 = vadd.f32 %v216_v20, %v190_v21  ;;  %v260_v23 = vpop.f32.mrb[1].mxu1 }
 0x1b4   :  { %v193_v24 = vpop.f32.mrb[2].mxu1 }
 0x1b5   :  { %v196_v25 = vmax.f32 %v191_v22, 0.0  ;;  %v261_v26 = vpop.f32.mrb[3].mxu1 }
 0x1b7   :  { %198 = vst.msk [vmem:[#allocation2] sm:$0xff] %vm197_vm2, %v196_v25 }
 0x1b8   :  { %285 = shalt.err (!%p282_p4)
}
 0x1b9   :  { %s286_s17 = scalar_lea.hbm %s384_s5, 128 }
 0x1ba   :  { %p287_p5 = scmp.ne.s32.totalorder %s384_s5, %s286_s17  ;;  %p290_p6 = scmp.lt.u32.totalorder %s286_s17, %s384_s5 }
 0x1bc   :  { %p292_p7 = pnand %p290_p6, %p287_p5 }
 0x1be   :  { %295 = shalt.err (!%p292_p7)
}
 0x1bf   :  { %208 = dma.vmem_to_hbm [thread:$0]  %s206_s3, 128, %s384_s5, [#allocation3]  }
 0x1c0   :  { %296 = dma.done.wait [#allocation3], 128  }
 0x1c1   :  { %297 = vsyncadd [#allocation3], 4294967168 }
 0x1c2   :  { %212 = vsyncpa [#allocation3], 1 }

</bundles_post_ra>
